<compile_context>
chip_gen: v5e
topology: v5e:2x2
jax: 0.10.0
libtpu: 0.0.40
codegen_flags: <defaults>
</compile_context>

<pallas_src>
import math
from functools import partial

import jax
import jax.numpy as jnp
from jax import lax
from jax.experimental import pallas as pl
from jax.experimental.pallas import tpu as pltpu


def _sublane_pack(dtype):
    itemsize = jnp.dtype(dtype).itemsize
    return max(8, 32 // itemsize)  # 8 for f32, 16 for bf16, 32 for int8


def _pick_tile_m(M, dtype, target=256):
    """Largest multiple of the sublane pack that divides M and is <= target."""
    pack = _sublane_pack(dtype)
    t = min(target, M)
    cand = t - (t % pack)
    while cand > 0:
        if M % cand == 0:
            return cand
        cand -= pack
    return M  # full-extent block is always legal


def _residual_body(x_ref, w_ref, b_ref, bits, o_ref, *,
                   alpha, beta, eps, d_model, dropout_rate):
    x = x_ref[...]  # (TM, D), native dtype

    # sublayer(x): dense D->D on the MXU, f32 accumulation.
    y = jnp.dot(x, w_ref[...], preferred_element_type=jnp.float32)
    y = y + b_ref[...].astype(jnp.float32)

    # LayerNormilization (faithful to the reference: denom = sqrt(std + eps),
    # std = per-row unbiased std of y).
    mean = jnp.mean(y, axis=-1, keepdims=True)
    centered = y - mean
    var_unbiased = jnp.sum(centered * centered, axis=-1, keepdims=True) * (
        1.0 / (d_model - 1))
    std = jnp.sqrt(var_unbiased)
    inv_denom = lax.rsqrt(std + eps)  # EUP slot; avoids a full-width VPU divide
    normed = alpha * centered * inv_denom + beta

    # Dropout (inverted scaling) via integer threshold compare on raw bits.
    if bits is not None:
        thr = jnp.uint32(min(int(round(dropout_rate * 4294967296.0)), 4294967295))
        keep = bits >= thr
        normed = jnp.where(keep, normed * (1.0 / (1.0 - dropout_rate)), 0.0)

    o_ref[...] = (x.astype(jnp.float32) + normed).astype(o_ref.dtype)


def _kernel_eval(x_ref, w_ref, b_ref, o_ref, **kw):
    _residual_body(x_ref, w_ref, b_ref, None, o_ref, **kw)


def _kernel_train(x_ref, w_ref, b_ref, bits_ref, o_ref, **kw):
    _residual_body(x_ref, w_ref, b_ref, bits_ref[...], o_ref, **kw)


def residual_connection(x, w, b, *, dropout_rate, training=False, rng_key=None,
                        alpha=1.0, beta=0.0, eps=1e-6, tile_m=None):
    """x: [B, S, D]; fused sublayer is a dense layer (w: [D, D], b: [D])."""
    B, S, D = x.shape
    M = B * S
    if tile_m is None:
        tile_m = _pick_tile_m(M, x.dtype)
    assert M % tile_m == 0, (M, tile_m)

    x2 = x.reshape(M, D)
    b2 = b.reshape(1, D)

    use_dropout = bool(training) and float(dropout_rate) > 0.0
    kw = dict(alpha=float(alpha), beta=float(beta), eps=float(eps),
              d_model=D, dropout_rate=float(dropout_rate))

    in_specs = [
        pl.BlockSpec((tile_m, D), lambda i: (i, 0)),  # x tile (streamed)
        pl.BlockSpec((D, D), lambda i: (0, 0)),       # weight (resident)
        pl.BlockSpec((1, D), lambda i: (0, 0)),       # bias (resident)
    ]
    inputs = [x2, w, b2]

    if use_dropout:
        if rng_key is None:
            rng_key = jax.random.PRNGKey(0)
        bits = jax.random.bits(rng_key, (M, D), dtype=jnp.uint32)
        in_specs.append(pl.BlockSpec((tile_m, D), lambda i: (i, 0)))
        inputs.append(bits)
        kernel = partial(_kernel_train, **kw)
    else:
        kernel = partial(_kernel_eval, **kw)

    # VMEM budget: double-buffered x/out(/bits) tiles + resident weight/bias.
    act_bytes = tile_m * D * jnp.dtype(x.dtype).itemsize
    vmem_needed = 4 * act_bytes                      # x + out, double-buffered
    if use_dropout:
        vmem_needed += 2 * tile_m * D * 4            # bits, double-buffered
    vmem_needed += 2 * (D * D + D) * jnp.dtype(w.dtype).itemsize
    vmem_limit = min(max(32 * 1024 * 1024, int(vmem_needed * 1.5)),
                     120 * 1024 * 1024)

    out = pl.pallas_call(
        kernel,
        out_shape=jax.ShapeDtypeStruct((M, D), x.dtype),
        grid_spec=pltpu.PrefetchScalarGridSpec(
            num_scalar_prefetch=0,
            grid=(M // tile_m,),
            in_specs=in_specs,
            out_specs=pl.BlockSpec((tile_m, D), lambda i: (i, 0)),
        ),
        compiler_params=pltpu.CompilerParams(
            dimension_semantics=("parallel",),
            vmem_limit_bytes=vmem_limit,
        ),
    )(*inputs)
    return out.reshape(B, S, D)


def _reference(x, w, b, *, alpha=1.0, beta=0.0, eps=1e-6):
    # Pure-JAX reference of the eval-mode forward (dropout = identity).
    y = jnp.einsum("bsd,de->bse", x, w) + b
    mean = jnp.mean(y, axis=-1, keepdims=True)
    centered = y - mean
    var_unbiased = jnp.sum(centered ** 2, axis=-1, keepdims=True) / (x.shape[-1] - 1)
    std = jnp.sqrt(var_unbiased)
    normed = alpha * centered / jnp.sqrt(std + eps) + beta
    return x + normed


if __name__ == "__main__":
    B, S, D = 2, 8, 128
    key = jax.random.PRNGKey(0)
    kx, kw_, kb, kd = jax.random.split(key, 4)
    x = jax.random.normal(kx, (B, S, D), dtype=jnp.float32)
    # Deterministic sublayer parameters (D -> D dense).
    w = jax.random.normal(kw_, (D, D), dtype=jnp.float32) / math.sqrt(D)
    b = jax.random.normal(kb, (D,), dtype=jnp.float32) * 0.01

    # Eval-mode run (dropout identity) — compare against pure-JAX reference.
    out = residual_connection(x, w, b, dropout_rate=0.1, training=False)
    out = jax.block_until_ready(out)
    ref = _reference(x, w, b)
    assert out.shape == (B, S, D)
    assert jnp.allclose(out, ref, atol=1e-4, rtol=1e-4), "mismatch vs reference"

    # Train-mode run (exercise the fused dropout path; mask bits streamed in).
    out_train = residual_connection(x, w, b, dropout_rate=0.1, training=True,
                                    rng_key=kd)
    out_train = jax.block_until_ready(out_train)
    assert out_train.shape == (B, S, D)

    print("KERNEL_OK")
</pallas_src>

<mosaic_0001>
module attributes {stable_mosaic.version = 11 : i64} {
  func.func @_kernel_eval(%arg0: i32, %arg1: memref<16x128xf32, #tpu.memory_space<vmem>>, %arg2: memref<128x128xf32, #tpu.memory_space<vmem>>, %arg3: memref<1x128xf32, #tpu.memory_space<vmem>>, %arg4: memref<16x128xf32, #tpu.memory_space<vmem>>) attributes {dimension_semantics = [#tpu.dimension_semantics<parallel>], iteration_bounds = array<i64: 1>, scalar_prefetch = 0 : i64, scratch_operands = 0 : i64, tpu.core_type = #tpu.core_type<tc>, window_params = [{transform_indices = @transform_0, window_bounds = array<i64: 16, 128>}, {pipeline_mode = #tpu.pipeline_mode<synchronous>, transform_indices = @transform_1, window_bounds = array<i64: 128, 128>}, {pipeline_mode = #tpu.pipeline_mode<synchronous>, transform_indices = @transform_2, window_bounds = array<i64: 1, 128>}, {transform_indices = @transform_3, window_bounds = array<i64: 16, 128>}]} {
    %c0 = arith.constant 0 : index
    %c0_0 = arith.constant 0 : index
    %0 = vector.load %arg1[%c0, %c0_0] : memref<16x128xf32, #tpu.memory_space<vmem>>, vector<16x128xf32>
    %c0_1 = arith.constant 0 : index
    %c0_2 = arith.constant 0 : index
    %1 = vector.load %arg2[%c0_1, %c0_2] : memref<128x128xf32, #tpu.memory_space<vmem>>, vector<128x128xf32>
    %cst = arith.constant dense<0.000000e+00> : vector<16x128xf32>
    %2 = tpu.matmul %0, %1, %cst {dimension_numbers = #tpu.dot_dimension_numbers<[1], [0], [0], [1], [0, 0, 1, 1], [], []>} : vector<16x128xf32>, vector<128x128xf32>, vector<16x128xf32> -> vector<16x128xf32>
    %c0_3 = arith.constant 0 : index
    %c0_4 = arith.constant 0 : index
    %3 = vector.load %arg3[%c0_3, %c0_4] : memref<1x128xf32, #tpu.memory_space<vmem>>, vector<1x128xf32>
    %4 = vector.broadcast %3 : vector<1x128xf32> to vector<16x128xf32>
    %5 = arith.addf %2, %4 : vector<16x128xf32>
    %cst_5 = arith.constant dense<0.000000e+00> : vector<16xf32>
    %6 = vector.multi_reduction <add>, %5, %cst_5 [1] : vector<16x128xf32> to vector<16xf32>
    %7 = vector.shape_cast %6 : vector<16xf32> to vector<16x1xf32>
    %cst_6 = arith.constant 1.280000e+02 : f32
    %8 = vector.broadcast %cst_6 : f32 to vector<16x1xf32>
    %9 = arith.divf %7, %8 : vector<16x1xf32>
    %10 = vector.broadcast %9 : vector<16x1xf32> to vector<16x128xf32>
    %11 = arith.subf %5, %10 : vector<16x128xf32>
    %12 = arith.mulf %11, %11 : vector<16x128xf32>
    %cst_7 = arith.constant dense<0.000000e+00> : vector<16xf32>
    %13 = vector.multi_reduction <add>, %12, %cst_7 [1] : vector<16x128xf32> to vector<16xf32>
    %14 = vector.shape_cast %13 : vector<16xf32> to vector<16x1xf32>
    %cst_8 = arith.constant 0.00787401571 : f32
    %15 = vector.broadcast %cst_8 : f32 to vector<16x1xf32>
    %16 = arith.mulf %14, %15 : vector<16x1xf32>
    %17 = math.sqrt %16 : vector<16x1xf32>
    %cst_9 = arith.constant 9.99999997E-7 : f32
    %18 = vector.broadcast %cst_9 : f32 to vector<16x1xf32>
    %19 = arith.addf %17, %18 : vector<16x1xf32>
    %20 = math.rsqrt %19 : vector<16x1xf32>
    %cst_10 = arith.constant 1.000000e+00 : f32
    %21 = vector.broadcast %cst_10 : f32 to vector<16x128xf32>
    %22 = arith.mulf %21, %11 : vector<16x128xf32>
    %23 = vector.broadcast %20 : vector<16x1xf32> to vector<16x128xf32>
    %24 = arith.mulf %22, %23 : vector<16x128xf32>
    %cst_11 = arith.constant 0.000000e+00 : f32
    %25 = vector.broadcast %cst_11 : f32 to vector<16x128xf32>
    %26 = arith.addf %24, %25 : vector<16x128xf32>
    %27 = arith.addf %0, %26 : vector<16x128xf32>
    %c0_12 = arith.constant 0 : index
    %c0_13 = arith.constant 0 : index
    %28 = vector.load %arg4[%c0_12, %c0_13] : memref<16x128xf32, #tpu.memory_space<vmem>>, vector<16x128xf32>
    tpu.vector_store %arg4[%c0_12, %c0_13], %27 {strides = array<i32>} : memref<16x128xf32, #tpu.memory_space<vmem>>, vector<16x128xf32>,
    return
  }
  func.func @transform_0(%arg0: i32) -> (i32, i32) {
    %c0_i32 = arith.constant 0 : i32
    %c0_i32_0 = arith.constant 0 : i32
    return %arg0, %c0_i32 : i32, i32
  }
  func.func @transform_1(%arg0: i32) -> (i32, i32) {
    %c0_i32 = arith.constant 0 : i32
    %c0_i32_0 = arith.constant 0 : i32
    %c0_i32_1 = arith.constant 0 : i32
    return %c0_i32, %c0_i32_0 : i32, i32
  }
  func.func @transform_2(%arg0: i32) -> (i32, i32) {
    %c0_i32 = arith.constant 0 : i32
    %c0_i32_0 = arith.constant 0 : i32
    %c0_i32_1 = arith.constant 0 : i32
    return %c0_i32, %c0_i32_0 : i32, i32
  }
  func.func @transform_3(%arg0: i32) -> (i32, i32) {
    %c0_i32 = arith.constant 0 : i32
    %c0_i32_0 = arith.constant 0 : i32
    return %arg0, %c0_i32 : i32, i32
  }
}

</mosaic_0001>

<bundles_post_ra>
// kernel: tpu_custom_call.1
= control target key start
LH: loop header
LB: loop body
LE: loop exit
PB: predicated region body
PF: predicated region fallthrough
CT: control target
= control target key end

     0   :  { %8 = vsyncpa [#allocation3], 0  ;;  %s360_s0 = inlined_call_operand.hbm [shape: f32[16,128], index: 0, kind: input, shape index: {}]   ;;  %s361_s1 = inlined_call_operand.hbm [shape: f32[128,128], index: 1, kind: input, shape index: {}]   ;;  %s362_s2 = inlined_call_operand.vmem [shape: f32[1,128], index: 2, kind: input, shape index: {}]   ;;  %s363_s3 = inlined_call_operand.hbm [shape: f32[16,128], index: 3, kind: output, shape index: {}]  }
   0x1   :  { %9 = vsyncpa [#allocation6], 0 }
   0x2   :  { %10 = vsyncpa [#allocation4], 0  ;;  %s15_s14 = sshll.u32 %s360_s0, 4  ;;  %s300_s15 = smov [#allocation2]   ;;  %s16_s14 = int_to_ptr.hbm [resolvable:$true] %s15_s14 }
   0x3   :  { %s17_s16 = sshll.u32 %s300_s15, 4  ;;  %s28_s19 = sshll.u32 %s361_s1, 4  ;;  %s18_s16 = int_to_ptr.vmem [resolvable:$true] %s17_s16  ;;  %s29_s19 = int_to_ptr.hbm [resolvable:$true] %s28_s19 }
   0x4   :  { %s301_s20 = smov 128   ;;  %s302_s21 = smov 8  }
   0x5   :  { %23 = dma.hbm_to_vmem [thread:$0]  %s16_s14, 256, %s18_s16, [#allocation3], %s301_s20, %s301_s20, %s302_s21  }
   0x6   :  { %s303_s22 = smov [#allocation5]  }
   0x7   :  { %s30_s23 = sshll.u32 %s303_s22, 4  ;;  %s31_s23 = int_to_ptr.vmem [resolvable:$true] %s30_s23 }
   0x8   :  { %36 = dma.hbm_to_vmem [thread:$0]  %s29_s19, 2048, %s31_s23, [#allocation6], %s301_s20, %s301_s20, %s302_s21  }
   0x9   :  { %294 = dma.done.wait [#allocation3], 256  }
   0xa   :  { %295 = vsyncadd [#allocation3], 4294967040 }
   0xb   :  { %296 = dma.done.wait [#allocation6], 2048  }
   0xc   :  { %297 = vsyncadd [#allocation6], 4294965248  ;;  %v64_v0 = vld [vmem:[#allocation5 + $0x78] sm:$0xff]  ;;  %v63_v1 = vld [vmem:[#allocation5 + $0x70] sm:$0xff]  ;;  %v304_v23 = vmov 128.0   ;;  %s175_s27 = sshll.u32 %s363_s3, 4  ;;  %s176_s27 = int_to_ptr.hbm [resolvable:$true] %s175_s27 }
   0xd   :  { %69 = vmatpush.msra.mxu0 %v64_v0  ;;  %189 = vmatpush.msra.mxu1 %v64_v0  ;;  %v62_v2 = vld [vmem:[#allocation5 + $0x68] sm:$0xff]  ;;  %v61_v3 = vld [vmem:[#allocation5 + $0x60] sm:$0xff]  ;;  %v60_v4 = vld [vmem:[#allocation5 + $0x58] sm:$0xff]  ;;  %212 = vrcp.f32 %v304_v23 }
   0xe   :  { %v59_v5 = vld [vmem:[#allocation5 + $0x50] sm:$0xff]  ;;  %v58_v6 = vld [vmem:[#allocation5 + $0x48] sm:$0xff]  ;;  %v57_v7 = vld [vmem:[#allocation5 + $0x40] sm:$0xff] }
   0xf   :  { %70 = vmatpush.msra.mxu0 %v63_v1  ;;  %190 = vmatpush.msra.mxu1 %v63_v1  ;;  %v56_v8 = vld [vmem:[#allocation5 + $0x38] sm:$0xff]  ;;  %v55_v9 = vld [vmem:[#allocation5 + $0x30] sm:$0xff]  ;;  %v54_v10 = vld [vmem:[#allocation5 + $0x28] sm:$0xff] }
  0x10   :  { %v53_v11 = vld [vmem:[#allocation5 + $0x20] sm:$0xff]  ;;  %v52_v12 = vld [vmem:[#allocation5 + $0x18] sm:$0xff]  ;;  %v51_v13 = vld [vmem:[#allocation5 + $0x10] sm:$0xff] }
  0x11   :  { %71 = vmatpush.msra.mxu0 %v62_v2  ;;  %191 = vmatpush.msra.mxu1 %v62_v2  ;;  %v50_v14 = vld [vmem:[#allocation5 + $0x8] sm:$0xff]  ;;  %v49_v15 = vld [vmem:[#allocation5] sm:$0xff]  ;;  %v338_v16 = vld [vmem:[#allocation2] sm:$0xff] }
  0x12   :  { %v340_v17 = vld [vmem:[#allocation2 + $0x8] sm:$0xff]  ;;  %v211_v18 = vld [vmem:[%s362_s2] ss:$0 sm:$0xff]  ;;  %s305_s2 = smov [#allocation7]  }
  0x13   :  { %72 = vmatpush.msra.mxu0 %v61_v3  ;;  %192 = vmatpush.msra.mxu1 %v61_v3  ;;  %v213_v24 = vpop.eup %212  ;;  %s173_s24 = sshll.u32 %s305_s2, 4  ;;  %s174_s24 = int_to_ptr.vmem [resolvable:$true] %s173_s24 }
  0x14   :  { %v97_v25 = vmul.f32 128.0, %v213_v24  ;;  %vm101_vm0 = vweird.f32 %v213_v24 }
  0x15   :  { %73 = vmatpush.msra.mxu0 %v60_v4  ;;  %193 = vmatpush.msra.mxu1 %v60_v4 }
  0x16   :  { %v98_v26 = vsub.f32 1.0, %v97_v25 }
  0x17   :  { %74 = vmatpush.msra.mxu0 %v59_v5  ;;  %194 = vmatpush.msra.mxu1 %v59_v5 }
  0x18   :  { %v99_v27 = vmul.f32 %v213_v24, %v98_v26 }
  0x19   :  { %75 = vmatpush.msra.mxu0 %v58_v6  ;;  %195 = vmatpush.msra.mxu1 %v58_v6 }
  0x1a   :  { %v100_v28 = vadd.f32 %v213_v24, %v99_v27 }
  0x1b   :  { %76 = vmatpush.msra.mxu0 %v57_v7  ;;  %196 = vmatpush.msra.mxu1 %v57_v7 }
  0x1c   :  { %v102_v29 = vsel %vm101_vm0, %v213_v24, %v100_v28 }
  0x1d   :  { %77 = vmatpush.msra.mxu0 %v56_v8  ;;  %197 = vmatpush.msra.mxu1 %v56_v8 }
  0x1f   :  { %78 = vmatpush.msra.mxu0 %v55_v9  ;;  %198 = vmatpush.msra.mxu1 %v55_v9 }
  0x21   :  { %79 = vmatpush.msra.mxu0 %v54_v10  ;;  %199 = vmatpush.msra.mxu1 %v54_v10 }
  0x23   :  { %80 = vmatpush.msra.mxu0 %v53_v11  ;;  %200 = vmatpush.msra.mxu1 %v53_v11 }
  0x25   :  { %81 = vmatpush.msra.mxu0 %v52_v12  ;;  %201 = vmatpush.msra.mxu1 %v52_v12 }
  0x27   :  { %82 = vmatpush.msra.mxu0 %v51_v13  ;;  %202 = vmatpush.msra.mxu1 %v51_v13 }
  0x29   :  { %83 = vmatpush.msra.mxu0 %v50_v14  ;;  %203 = vmatpush.msra.mxu1 %v50_v14 }
  0x2b   :  { %84 = vmatpush.msra.mxu0 %v49_v15  ;;  %204 = vmatpush.msra.mxu1 %v49_v15 }
  0x2c   :  { %85 = vmatmul.f32.vlgmr.msra.gmra.mxu0 %v338_v16  ;;  %88 = vmatmul.f32.vlgmr.msra.gmra.mxu1 %v340_v17 }
  0xa9   :  { %v86_v19 = vpop.f32.mrf.mxu0  ;;  %v89_v21 = vpop.f32.mrf.mxu1 }
  0xaa   :  { %v87_v20 = vadd.f32 %v211_v18, %v86_v19  ;;  %v90_v22 = vadd.f32 %v211_v18, %v89_v21 }
  0xac   :  { %92 = vadd.xlane.f32.xlu0 %v87_v20 }
  0xb4   :  { %94 = vadd.xlane.f32.xlu0 %v90_v22 }
 0x11f   :  { %v93_v30 = vpop.xlane.xlu0 %92 }
 0x120   :  { %v103_v31 = vmul.f32 %v102_v29, %v93_v30 }
 0x122   :  { %v105_v32 = vsub.f32 %v87_v20, %v103_v31 }
 0x124   :  { %v107_v33 = vmul.f32 %v105_v32, %v105_v32 }
 0x126   :  { %109 = vadd.xlane.f32.xlu1 %v107_v33 }
 0x127   :  { %v95_v34 = vpop.xlane.xlu0 %94 }
 0x128   :  { %v104_v35 = vmul.f32 %v102_v29, %v95_v34 }
 0x12a   :  { %v347_v36 = vsub.f32 %v90_v22, %v104_v35 }
 0x12c   :  { %v108_v37 = vmul.f32 %v347_v36, %v347_v36 }
 0x12e   :  { %111 = vadd.xlane.f32.xlu1 %v108_v37 }
 0x199   :  { %v110_v38 = vpop.xlane.xlu1 %109 }
 0x19a   :  { %v113_v39 = vmul.f32 0.007874016, %v110_v38 }
 0x19c   :  { %214 = vrsqrt.f32 %v113_v39  ;;  %vm122_vm1 = vcmp.eq.f32.partialorder %v113_v39, inf  ;;  %v125_v52 = vand.u32 2147483648, %v113_v39  ;;  %vm124_vm2 = vcmp.eq.f32.partialorder %v113_v39, 0.0 }
 0x1a1   :  { %v112_v40 = vpop.xlane.xlu1 %111 }
 0x1a2   :  { %v215_v41 = vpop.eup %214  ;;  %v114_v42 = vmul.f32 0.007874016, %v112_v40 }
 0x1a3   :  { %v116_v43 = vmul.f32 %v215_v41, %v113_v39 }
 0x1a4   :  { %216 = vrsqrt.f32 %v114_v42  ;;  %vm134_vm3 = vcmp.eq.f32.partialorder %v114_v42, inf  ;;  %v137_v60 = vand.u32 2147483648, %v114_v42  ;;  %vm136_vm4 = vcmp.eq.f32.partialorder %v114_v42, 0.0 }
 0x1a5   :  { %v117_v44 = vmul.f32 %v215_v41, %v116_v43 }
 0x1a7   :  { %v118_v45 = vmul.f32 0.5, %v117_v44 }
 0x1a9   :  { %v119_v46 = vsub.f32 1.5, %v118_v45 }
 0x1aa   :  { %v217_v47 = vpop.eup %216 }
 0x1ab   :  { %v120_v48 = vmul.f32 %v215_v41, %v119_v46  ;;  %v128_v49 = vmul.f32 %v217_v47, %v114_v42 }
 0x1ad   :  { %v121_v50 = vmul.f32 %v120_v48, %v113_v39  ;;  %v129_v51 = vmul.f32 %v217_v47, %v128_v49 }
 0x1af   :  { %v130_v53 = vmul.f32 0.5, %v129_v51  ;;  %v123_v54 = vsel %vm122_vm1, %v113_v39, %v121_v50 }
 0x1b0   :  { %v126_v55 = vsel %vm124_vm2, %v125_v52, %v123_v54 }
 0x1b1   :  { %v131_v56 = vsub.f32 1.5, %v130_v53  ;;  %v139_v57 = vadd.f32 1e-06, %v126_v55 }
 0x1b3   :  { %v132_v58 = vmul.f32 %v217_v47, %v131_v56  ;;  %218 = vrsqrt.f32 %v139_v57  ;;  %vm147_vm6 = vweird.f32 %v139_v57 }
 0x1b5   :  { %v133_v59 = vmul.f32 %v132_v58, %v114_v42 }
 0x1b7   :  { %v135_v61 = vsel %vm134_vm3, %v114_v42, %v133_v59 }
 0x1b8   :  { %v138_v62 = vsel %vm136_vm4, %v137_v60, %v135_v61 }
 0x1b9   :  { %v219_v63 = vpop.eup %218  ;;  %v140_v0 = vadd.f32 1e-06, %v138_v62 }
 0x1ba   :  { %v142_v1 = vmul.f32 %v219_v63, %v139_v57  ;;  %vm148_vm5 = vweird.f32 %v219_v63 }
 0x1bb   :  { %220 = vrsqrt.f32 %v140_v0  ;;  %vm149_vm7 = vmor %vm147_vm6, %vm148_vm5  ;;  %vm157_vm9 = vweird.f32 %v140_v0 }
 0x1bc   :  { %v143_v2 = vmul.f32 %v219_v63, %v142_v1 }
 0x1be   :  { %v144_v3 = vmul.f32 0.5, %v143_v2 }
 0x1c0   :  { %v145_v4 = vsub.f32 1.5, %v144_v3 }
 0x1c1   :  { %v221_v5 = vpop.eup %220 }
 0x1c2   :  { %v146_v6 = vmul.f32 %v219_v63, %v145_v4  ;;  %v152_v7 = vmul.f32 %v221_v5, %v140_v0  ;;  %vm158_vm8 = vweird.f32 %v221_v5 }
 0x1c3   :  { %vm159_vm10 = vmor %vm157_vm9, %vm158_vm8 }
 0x1c4   :  { %v150_v8 = vsel %vm149_vm7, %v219_v63, %v146_v6  ;;  %v153_v9 = vmul.f32 %v221_v5, %v152_v7 }
 0x1c5   :  { %v161_v10 = vmul.f32 %v150_v8, %v105_v32 }
 0x1c6   :  { %v154_v11 = vmul.f32 0.5, %v153_v9 }
 0x1c7   :  { %v165_v12 = vadd.f32 %v161_v10, %v338_v16 }
 0x1c8   :  { %v155_v13 = vsub.f32 1.5, %v154_v11 }
 0x1c9   :  { %167 = vst [vmem:[#allocation7] sm:$0xff] %v165_v12 }
 0x1ca   :  { %v156_v14 = vmul.f32 %v221_v5, %v155_v13 }
 0x1cc   :  { %v160_v15 = vsel %vm159_vm10, %v221_v5, %v156_v14 }
 0x1cd   :  { %v162_v18 = vmul.f32 %v160_v15, %v347_v36 }
 0x1cf   :  { %v166_v19 = vadd.f32 %v162_v18, %v340_v17 }
 0x1d1   :  { %168 = vst [vmem:[#allocation7 + $0x8] sm:$0xff] %v166_v19 }
 0x1d2   :  { %181 = dma.vmem_to_hbm [thread:$0]  %s174_s24, 256, %s176_s27, [#allocation4], %s301_s20, %s301_s20, %s302_s21  }
 0x1d3   :  { %298 = dma.done.wait [#allocation4], 256  }
 0x1d4   :  { %299 = vsyncadd [#allocation4], 4294967040 }
 0x1d5   :  { %186 = vsyncpa [#allocation3], 1 }
 0x1d6   :  { %187 = vsyncpa [#allocation6], 1 }
 0x1d7   :  { %188 = vsyncpa [#allocation4], 1 }

</bundles_post_ra>
